<compile_context>
chip_gen: v7x
topology: tpu7x:2x2x1
jax: 0.10.0
libtpu: 0.0.40
codegen_flags: <defaults>
</compile_context>

<pallas_src>
import jax
import jax.numpy as jnp
from jax.experimental import pallas as pl
from jax.experimental.pallas import tpu as pltpu


def qnet_kernel(x_ref, w1_ref, b1_ref, w2_ref, b2_ref, w3_ref, b3_ref, o_ref):
    # x_ref: (bm, S) f32 tile of the state. w*_ref: (in, out) bf16. b*_ref: (1, out) f32.
    x = x_ref[...].astype(jnp.bfloat16)                               # in-kernel cast (VPU slack)

    h1 = jnp.dot(x, w1_ref[...], preferred_element_type=jnp.float32) + b1_ref[...]
    h1 = jnp.maximum(h1, 0.0).astype(jnp.bfloat16)                    # bf16 right after ReLU

    h2 = jnp.dot(h1, w2_ref[...], preferred_element_type=jnp.float32) + b2_ref[...]
    h2 = jnp.maximum(h2, 0.0).astype(jnp.bfloat16)

    # PyTorch's x.view(x.size(0), -1) is a no-op here (h2 is already 2-D).
    q = jnp.dot(h2, w3_ref[...], preferred_element_type=jnp.float32) + b3_ref[...]
    o_ref[...] = q.astype(o_ref.dtype)                                # direct (bm, A) store


def _tpu_topology():
    """(vmem_capacity_bytes, num_tensorcores) with safe fallbacks."""
    vmem_cap = 64 << 20          # conservative default (v7x per-TC VMEM)
    num_tc = 1
    try:
        info = pltpu.get_tpu_info()
        vmem_cap = int(getattr(info, "vmem_capacity_bytes", vmem_cap))
        for name in ("num_cores", "tensorcores_per_chip", "num_tensorcores", "core_count"):
            v = getattr(info, name, None)
            if v:
                num_tc = int(v)
                break
    except Exception:
        pass
    try:
        v = getattr(jax.devices()[0], "num_cores", None)
        if v:
            num_tc = max(num_tc, int(v))
    except Exception:
        pass
    return vmem_cap, max(1, num_tc)


def _pick_batch_tile(B, max_rows, num_tc):
    """Largest bm (multiple of 8, dividing B, <= max_rows). On single-TC chips use the
    whole batch in one step when it fits; on multi-TC chips prefer a step count that is
    a multiple of the core count so each TensorCore gets equal work."""
    max_rows = max(8, int(max_rows))
    if B % 8 != 0 or (num_tc <= 1 and B <= max_rows):
        return B
    divisors = [d for d in range(8, min(B, max_rows) + 1, 8) if B % d == 0]
    if not divisors:
        return B
    if num_tc > 1:
        even = [d for d in divisors if (B // d) % num_tc == 0]
        if even:
            return max(even)
    return max(divisors)


def qnetwork_forward(state, params, *, bm=None):
    """state: (B, state_size) f32; params: PyTorch-layout weights (out,in), biases (out,).
    Returns Q-values of shape (B, action_size) in f32."""
    B_in, S = state.shape
    H1 = params["w1"].shape[0]
    H2 = params["w2"].shape[0]
    A = params["w3"].shape[0]

    vmem_cap, num_tc = _tpu_topology()

    # Resident weights/biases + per-batch-row VMEM cost (double-buffered x/out tiles,
    # f32+bf16 intermediates).
    weight_bytes = 2 * (S * H1 + H1 * H2 + H2 * A) + 4 * (H1 + H2 + A)
    per_row_bytes = 8 * S + 6 * (H1 + H2) + 12 * A
    budget_rows = max(8, int((0.30 * vmem_cap - 2 * weight_bytes) // per_row_bytes))

    # Ragged *large* batch: pad to a sublane multiple so it can be tiled instead of
    # forcing one oversized block past the VMEM budget.  Small ragged batches run as a
    # single full block (always legal) with no padding copy.
    x = state
    if B_in % 8 != 0 and B_in > budget_rows:
        x = jnp.pad(x, ((0, (-B_in) % 8), (0, 0)))
    B = x.shape[0]

    if bm is None:
        bm = _pick_batch_tile(B, budget_rows, num_tc)
    assert B % bm == 0, "batch tile must divide the (possibly padded) batch"
    assert bm == B or bm % 8 == 0, "sublane-axis batch tile must be a multiple of 8"
    grid = (B // bm,)

    # One-time prep of the tiny weights: (out,in) -> (in,out) bf16, biases -> (1,out) f32.
    w1t = params["w1"].T.astype(jnp.bfloat16)          # (S,  H1)
    w2t = params["w2"].T.astype(jnp.bfloat16)          # (H1, H2)
    w3t = params["w3"].T.astype(jnp.bfloat16)          # (H2, A)
    b1 = params["b1"].reshape(1, H1).astype(jnp.float32)
    b2 = params["b2"].reshape(1, H2).astype(jnp.float32)
    b3 = params["b3"].reshape(1, A).astype(jnp.float32)

    needed = 2 * weight_bytes + per_row_bytes * bm + (2 << 20)
    vmem_limit = int(min(0.9 * vmem_cap, max(2 * needed, 16 << 20)))

    flops = 2 * B * (S * H1 + H1 * H2 + H2 * A)
    bytes_accessed = 4 * B * S + 4 * B * A + weight_bytes

    def rep(shape):  # weights/biases replicated to every grid step
        return pl.BlockSpec(shape, lambda i: (0, 0))

    q = pl.pallas_call(
        qnet_kernel,
        out_shape=jax.ShapeDtypeStruct((B, A), jnp.float32),
        grid_spec=pltpu.PrefetchScalarGridSpec(
            num_scalar_prefetch=0,
            grid=grid,
            in_specs=[
                pl.BlockSpec((bm, S), lambda i: (i, 0)),   # raw f32 state tile
                rep(w1t.shape), rep(b1.shape),
                rep(w2t.shape), rep(b2.shape),
                rep(w3t.shape), rep(b3.shape),
            ],
            out_specs=pl.BlockSpec((bm, A), lambda i: (i, 0)),
        ),
        compiler_params=pltpu.CompilerParams(
            dimension_semantics=("parallel",),
            vmem_limit_bytes=vmem_limit),
        cost_estimate=pl.CostEstimate(
            flops=flops, transcendentals=0, bytes_accessed=bytes_accessed),
    )(x, w1t, b1, w2t, b2, w3t, b3)

    return q[:B_in] if B != B_in else q


def init_params(key, state_size, hidden_sizes, action_size):
    """nn.Linear-style init (U[-1/sqrt(fan_in), 1/sqrt(fan_in)]), PyTorch (out,in)/(out,) layout."""
    dims = [state_size, hidden_sizes[0], hidden_sizes[1], action_size]
    params = {}
    for li in range(3):
        fan_in, fan_out = dims[li], dims[li + 1]
        key, kw, kb = jax.random.split(key, 3)
        bound = 1.0 / float(jnp.sqrt(jnp.float32(fan_in)))
        params[f"w{li+1}"] = jax.random.uniform(
            kw, (fan_out, fan_in), jnp.float32, minval=-bound, maxval=bound)
        params[f"b{li+1}"] = jax.random.uniform(
            kb, (fan_out,), jnp.float32, minval=-bound, maxval=bound)
    return params


def qnetwork_ref(state, params):
    """Reference MLP emulating the kernel's bf16-input / f32-accumulate precision."""
    def lin(x_bf16, w, b):
        return (x_bf16.astype(jnp.float32)
                @ w.astype(jnp.bfloat16).astype(jnp.float32).T
                + b.astype(jnp.float32)[None, :])

    x = state.astype(jnp.bfloat16)
    h1 = jnp.maximum(lin(x, params["w1"], params["b1"]), 0.0).astype(jnp.bfloat16)
    h2 = jnp.maximum(lin(h1, params["w2"], params["b2"]), 0.0).astype(jnp.bfloat16)
    return lin(h2, params["w3"], params["b3"])


if __name__ == "__main__":
    state_size = 16
    hidden_sizes = (64, 32)
    action_size = 4
    batch = 8

    key = jax.random.PRNGKey(0)
    key, kx = jax.random.split(key)
    state = jax.random.normal(kx, (batch, state_size), jnp.float32)
    params = init_params(key, state_size, hidden_sizes, action_size)

    out = jax.block_until_ready(qnetwork_forward(state, params))

    ref = qnetwork_ref(state, params)
    assert out.shape == (batch, action_size)
    assert jnp.allclose(out, ref, atol=1e-3, rtol=1e-3), "mismatch vs reference"
    print("KERNEL_OK")
</pallas_src>

<mosaic_0001>
module attributes {stable_mosaic.version = 11 : i64} {
  func.func @qnet_kernel(%arg0: i32, %arg1: memref<8x16xf32, #tpu.memory_space<vmem>>, %arg2: memref<16x64xbf16, #tpu.memory_space<vmem>>, %arg3: memref<1x64xf32, #tpu.memory_space<vmem>>, %arg4: memref<64x32xbf16, #tpu.memory_space<vmem>>, %arg5: memref<1x32xf32, #tpu.memory_space<vmem>>, %arg6: memref<32x4xbf16, #tpu.memory_space<vmem>>, %arg7: memref<1x4xf32, #tpu.memory_space<vmem>>, %arg8: memref<8x4xf32, #tpu.memory_space<vmem>>) attributes {dimension_semantics = [#tpu.dimension_semantics<parallel>], iteration_bounds = array<i64: 1>, scalar_prefetch = 0 : i64, scratch_operands = 0 : i64, tpu.core_type = #tpu.core_type<tc>, window_params = [{transform_indices = @transform_0, window_bounds = array<i64: 8, 16>}, {pipeline_mode = #tpu.pipeline_mode<synchronous>, transform_indices = @transform_1, window_bounds = array<i64: 16, 64>}, {pipeline_mode = #tpu.pipeline_mode<synchronous>, transform_indices = @transform_2, window_bounds = array<i64: 1, 64>}, {pipeline_mode = #tpu.pipeline_mode<synchronous>, transform_indices = @transform_3, window_bounds = array<i64: 64, 32>}, {pipeline_mode = #tpu.pipeline_mode<synchronous>, transform_indices = @transform_4, window_bounds = array<i64: 1, 32>}, {pipeline_mode = #tpu.pipeline_mode<synchronous>, transform_indices = @transform_5, window_bounds = array<i64: 32, 4>}, {pipeline_mode = #tpu.pipeline_mode<synchronous>, transform_indices = @transform_6, window_bounds = array<i64: 1, 4>}, {transform_indices = @transform_7, window_bounds = array<i64: 8, 4>}]} {
    %c0 = arith.constant 0 : index
    %c0_0 = arith.constant 0 : index
    %0 = vector.load %arg1[%c0, %c0_0] : memref<8x16xf32, #tpu.memory_space<vmem>>, vector<8x16xf32>
    %1 = arith.truncf %0 : vector<8x16xf32> to vector<8x16xbf16>
    %c0_1 = arith.constant 0 : index
    %c0_2 = arith.constant 0 : index
    %2 = vector.load %arg2[%c0_1, %c0_2] : memref<16x64xbf16, #tpu.memory_space<vmem>>, vector<16x64xbf16>
    %cst = arith.constant dense<0.000000e+00> : vector<8x64xf32>
    %3 = tpu.matmul %1, %2, %cst {dimension_numbers = #tpu.dot_dimension_numbers<[1], [0], [0], [1], [0, 0, 1, 1], [], []>} : vector<8x16xbf16>, vector<16x64xbf16>, vector<8x64xf32> -> vector<8x64xf32>
    %c0_3 = arith.constant 0 : index
    %c0_4 = arith.constant 0 : index
    %4 = vector.load %arg3[%c0_3, %c0_4] : memref<1x64xf32, #tpu.memory_space<vmem>>, vector<1x64xf32>
    %5 = vector.broadcast %4 : vector<1x64xf32> to vector<8x64xf32>
    %6 = arith.addf %3, %5 : vector<8x64xf32>
    %cst_5 = arith.constant 0.000000e+00 : f32
    %7 = vector.broadcast %cst_5 : f32 to vector<8x64xf32>
    %8 = arith.maximumf %6, %7 : vector<8x64xf32>
    %9 = arith.truncf %8 : vector<8x64xf32> to vector<8x64xbf16>
    %c0_6 = arith.constant 0 : index
    %c0_7 = arith.constant 0 : index
    %10 = vector.load %arg4[%c0_6, %c0_7] : memref<64x32xbf16, #tpu.memory_space<vmem>>, vector<64x32xbf16>
    %cst_8 = arith.constant dense<0.000000e+00> : vector<8x32xf32>
    %11 = tpu.matmul %9, %10, %cst_8 {dimension_numbers = #tpu.dot_dimension_numbers<[1], [0], [0], [1], [0, 0, 1, 1], [], []>} : vector<8x64xbf16>, vector<64x32xbf16>, vector<8x32xf32> -> vector<8x32xf32>
    %c0_9 = arith.constant 0 : index
    %c0_10 = arith.constant 0 : index
    %12 = vector.load %arg5[%c0_9, %c0_10] : memref<1x32xf32, #tpu.memory_space<vmem>>, vector<1x32xf32>
    %13 = vector.broadcast %12 : vector<1x32xf32> to vector<8x32xf32>
    %14 = arith.addf %11, %13 : vector<8x32xf32>
    %cst_11 = arith.constant 0.000000e+00 : f32
    %15 = vector.broadcast %cst_11 : f32 to vector<8x32xf32>
    %16 = arith.maximumf %14, %15 : vector<8x32xf32>
    %17 = arith.truncf %16 : vector<8x32xf32> to vector<8x32xbf16>
    %c0_12 = arith.constant 0 : index
    %c0_13 = arith.constant 0 : index
    %18 = vector.load %arg6[%c0_12, %c0_13] : memref<32x4xbf16, #tpu.memory_space<vmem>>, vector<32x4xbf16>
    %cst_14 = arith.constant dense<0.000000e+00> : vector<8x4xf32>
    %19 = tpu.matmul %17, %18, %cst_14 {dimension_numbers = #tpu.dot_dimension_numbers<[1], [0], [0], [1], [0, 0, 1, 1], [], []>} : vector<8x32xbf16>, vector<32x4xbf16>, vector<8x4xf32> -> vector<8x4xf32>
    %c0_15 = arith.constant 0 : index
    %c0_16 = arith.constant 0 : index
    %20 = vector.load %arg7[%c0_15, %c0_16] : memref<1x4xf32, #tpu.memory_space<vmem>>, vector<1x4xf32>
    %21 = vector.broadcast %20 : vector<1x4xf32> to vector<8x4xf32>
    %22 = arith.addf %19, %21 : vector<8x4xf32>
    %c0_17 = arith.constant 0 : index
    %c0_18 = arith.constant 0 : index
    %23 = vector.load %arg8[%c0_17, %c0_18] : memref<8x4xf32, #tpu.memory_space<vmem>>, vector<8x4xf32>
    tpu.vector_store %arg8[%c0_17, %c0_18], %22 {strides = array<i32>} : memref<8x4xf32, #tpu.memory_space<vmem>>, vector<8x4xf32>,
    return
  }
  func.func @transform_0(%arg0: i32) -> (i32, i32) {
    %c0_i32 = arith.constant 0 : i32
    %c0_i32_0 = arith.constant 0 : i32
    return %arg0, %c0_i32 : i32, i32
  }
  func.func @transform_1(%arg0: i32) -> (i32, i32) {
    %c0_i32 = arith.constant 0 : i32
    %c0_i32_0 = arith.constant 0 : i32
    %c0_i32_1 = arith.constant 0 : i32
    return %c0_i32, %c0_i32_0 : i32, i32
  }
  func.func @transform_2(%arg0: i32) -> (i32, i32) {
    %c0_i32 = arith.constant 0 : i32
    %c0_i32_0 = arith.constant 0 : i32
    %c0_i32_1 = arith.constant 0 : i32
    return %c0_i32, %c0_i32_0 : i32, i32
  }
  func.func @transform_3(%arg0: i32) -> (i32, i32) {
    %c0_i32 = arith.constant 0 : i32
    %c0_i32_0 = arith.constant 0 : i32
    %c0_i32_1 = arith.constant 0 : i32
    return %c0_i32, %c0_i32_0 : i32, i32
  }
  func.func @transform_4(%arg0: i32) -> (i32, i32) {
    %c0_i32 = arith.constant 0 : i32
    %c0_i32_0 = arith.constant 0 : i32
    %c0_i32_1 = arith.constant 0 : i32
    return %c0_i32, %c0_i32_0 : i32, i32
  }
  func.func @transform_5(%arg0: i32) -> (i32, i32) {
    %c0_i32 = arith.constant 0 : i32
    %c0_i32_0 = arith.constant 0 : i32
    %c0_i32_1 = arith.constant 0 : i32
    return %c0_i32, %c0_i32_0 : i32, i32
  }
  func.func @transform_6(%arg0: i32) -> (i32, i32) {
    %c0_i32 = arith.constant 0 : i32
    %c0_i32_0 = arith.constant 0 : i32
    %c0_i32_1 = arith.constant 0 : i32
    return %c0_i32, %c0_i32_0 : i32, i32
  }
  func.func @transform_7(%arg0: i32) -> (i32, i32) {
    %c0_i32 = arith.constant 0 : i32
    %c0_i32_0 = arith.constant 0 : i32
    return %arg0, %c0_i32 : i32, i32
  }
}

</mosaic_0001>

<bundles_post_ra>
// kernel: tpu_custom_call.1
= control target key start
LH: loop header
LB: loop body
LE: loop exit
PB: predicated region body
PF: predicated region fallthrough
CT: control target
= control target key end

     0   :  { %v306_v0 = vmov 0.0   ;;  %vm307_vm0 = vmmov 0   ;;  %vm44_vm1 = vcmask 130048   ;;  %vm129_vm2 = vcmask 523264   ;;  %s384_s1 = inlined_call_operand.vmem [shape: bf16[16,64], index: 1, kind: input, shape index: {}]   ;;  %s385_s0 = inlined_call_operand.vmem [shape: f32[8,16], index: 0, kind: input, shape index: {}]   ;;  %s386_s3 = inlined_call_operand.vmem [shape: bf16[64,32], index: 3, kind: input, shape index: {}]   ;;  %s387_s5 = inlined_call_operand.vmem [shape: bf16[32,4], index: 5, kind: input, shape index: {}]   ;;  %s388_s2 = inlined_call_operand.vmem [shape: f32[1,64], index: 2, kind: input, shape index: {}]   ;;  %s389_s4 = inlined_call_operand.vmem [shape: f32[1,32], index: 4, kind: input, shape index: {}]   ;;  %s390_s6 = inlined_call_operand.vmem [shape: f32[1,4], index: 6, kind: input, shape index: {}]   ;;  %s391_s7 = inlined_call_operand.vmem [shape: f32[8,4], index: 7, kind: output, shape index: {}]  }
   0x1   :  { %271 = vmatprep.subr.bf16.mxu0 %v306_v0  ;;  %v299_v1 = vld [vmem:[%s384_s1] sm:$0xff]   ;;  %273 = vmatprep.mubr.msk.bf16.mxu0 %vm307_vm0, %v306_v0  ;;  %v301_v5 = vld [vmem:[%s386_s3 + $0x8] sm:$0xff]   ;;  %v302_v6 = vld [vmem:[%s386_s3 + $0x10] sm:$0xff]   ;;  %vm198_vm3 = vcmask 261120   ;;  %vm242_vm4 = vcmask 31744  }
   0x2   :  { %v27_v2 = vld [vmem:[%s385_s0] sm:$0xff]  ;;  %277 = vmatprep.subr.bf16.mxu1 %v306_v0  ;;  %285 = vmatprep.mubr.msk.bf16.mxu1 %vm307_vm0, %v306_v0  ;;  %v303_v7 = vld [vmem:[%s386_s3 + $0x18] sm:$0xff]   ;;  %v305_v17 = vld [vmem:[%s387_s5 + $0x8] sm:$0xff]  }
   0x3   :  { %272 = vmatpush3.bf16.msra.mxu0 %v299_v1  ;;  %v28_v3 = vpack.c.bf16 %v27_v2, %v27_v2  ;;  %v300_v4 = vld [vmem:[%s386_s3] sm:$0xff]  }
   0x4   :  { %289 = vmatprep.subr.bf16.mxu0 %v306_v0  ;;  %278 = vmatpush3.bf16.msra.mxu1 %v300_v4  ;;  %v304_v8 = vld [vmem:[%s387_s5] sm:$0xff]  }
   0x5   :  { %279 = vmatprep.subr.bf16.mxu1 %v306_v0  ;;  %v248_v9 = vld [vmem:[%s388_s2] ss:$0 sm:$0xff] }
   0x6   :  { %274 = vmatmul.mubr.msk.bf16.vlgmr.msra.gmra.mrb[0].mxu0 %vm44_vm1, %v28_v3  ;;  %v251_v18 = vld [vmem:[%s389_s4] ss:$0 sm:$0xff] }
   0x7   :  { %293 = vmatprep.mubr.msk.bf16.mxu0 %vm307_vm0, %v306_v0  ;;  %290 = vmatpush3.bf16.msra.mxu0 %v304_v8  ;;  %v257_v26 = vld [vmem:[%s390_s6] ss:$0 sm:$0xff] }
   0x8   :  { %280 = vmatpush3.bf16.msra.mxu1 %v301_v5  ;;  %291 = vmatprep.subr.bf16.mxu0 %v306_v0 }
   0x9   :  { %281 = vmatprep.subr.bf16.mxu1 %v306_v0 }
   0xb   :  { %292 = vmatpush3.bf16.msra.mxu0 %v305_v17 }
   0xc   :  { %282 = vmatpush3.bf16.msra.mxu1 %v302_v6 }
   0xd   :  { %283 = vmatprep.subr.bf16.mxu1 %v306_v0 }
  0x10   :  { %284 = vmatpush3.bf16.msra.mxu1 %v303_v7 }
  0xd9   :  { %v82_v10 = vpop.f32.mrb[0].mxu0 }
  0xda   :  { %v83_v11 = vadd.f32 %v248_v9, %v82_v10  ;;  %v275_v12 = vpop.f32.mrb[1].mxu0 }
  0xdb   :  { %v85_v13 = vpop.f32.mrb[2].mxu0 }
  0xdc   :  { %v88_v14 = vmax.f32 %v83_v11, 0.0  ;;  %v276_v15 = vpop.f32.mrb[3].mxu0 }
  0xde   :  { %v89_v16 = vpack.c.bf16 %v88_v14, %v88_v14 }
  0xe0   :  { %286 = vmatmul.mubr.msk.bf16.vlgmr.msra.gmra.mrb[0].mxu1 %vm129_vm2, %v89_v16 }
 0x1b3   :  { %v167_v19 = vpop.f32.mrb[0].mxu1 }
 0x1b4   :  { %v168_v20 = vadd.f32 %v251_v18, %v167_v19  ;;  %v287_v21 = vpop.f32.mrb[1].mxu1 }
 0x1b5   :  { %v170_v22 = vpop.f32.mrb[2].mxu1 }
 0x1b6   :  { %v173_v23 = vmax.f32 %v168_v20, 0.0  ;;  %v288_v24 = vpop.f32.mrb[3].mxu1 }
 0x1b8   :  { %v174_v25 = vpack.c.bf16 %v173_v23, %v173_v23 }
 0x1ba   :  { %294 = vmatmul.mubr.msk.bf16.vlgmr.msra.gmra.mrb[4].mxu0 %vm198_vm3, %v174_v25 }
 0x28d   :  { %v236_v27 = vpop.f32.mrb[4].mxu0 }
 0x28e   :  { %v237_v28 = vadd.f32 %v257_v26, %v236_v27  ;;  %v295_v29 = vpop.f32.mrb[5].mxu0 }
 0x28f   :  { %v239_v30 = vpop.f32.mrb[6].mxu0 }
 0x290   :  { %243 = vst.msk [vmem:[%s391_s7] sm:$0xff] %vm242_vm4, %v237_v28  ;;  %v296_v31 = vpop.f32.mrb[7].mxu0 }

</bundles_post_ra>
